<compile_context>
chip_gen: v5e
topology: v5e:2x2
jax: 0.10.0
libtpu: 0.0.40
codegen_flags: <defaults>
</compile_context>

<pallas_src>
import functools

import jax
import jax.numpy as jnp
from jax.experimental import pallas as pl
from jax.experimental.pallas import tpu as pltpu

MARGIN = 1.0   # config.loss_margin
EPS = 1e-6     # PyTorch default eps in pairwise_distance

# Default rows per block. Multiple of 8. Chosen so 3 inputs x 2 pipeline
# buffers x TB x D x 4B stays well inside the default scoped-VMEM limit even
# on v7x (64 MiB part / 32 MiB scoped) for typical embedding widths.
DEFAULT_BLOCK_ROWS = 512


def _triplet_partial_kernel(a_ref, p_ref, n_ref, o_ref, *, margin, eps, batch,
                            block_rows):
    i = pl.program_id(0)

    a = a_ref[...]
    p = p_ref[...]
    n = n_ref[...]
    if a.dtype != jnp.float32:          # accept bf16 embeddings, upcast on VPU
        a = a.astype(jnp.float32)
        p = p.astype(jnp.float32)
        n = n.astype(jnp.float32)

    # pairwise L2 distances with PyTorch's eps offset, reduced over feature dim
    dp = a - p + eps
    dn = a - n + eps
    d_pos = jnp.sqrt(jnp.sum(dp * dp, axis=-1, keepdims=True))   # (TB, 1)
    d_neg = jnp.sqrt(jnp.sum(dn * dn, axis=-1, keepdims=True))   # (TB, 1)

    per_row = jnp.maximum(d_pos - d_neg + margin, 0.0)           # (TB, 1)

    # Mask rows past the true batch size (ragged last block would otherwise
    # contribute `margin` per padded row).
    row_ids = jax.lax.broadcasted_iota(jnp.int32, per_row.shape, 0) + i * block_rows
    per_row = jnp.where(row_ids < batch, per_row, 0.0)

    partial = jnp.sum(per_row, keepdims=True)                    # (1, 1)
    # Lane-dense partial-sum output for this block; final reduction in wrapper.
    o_ref[...] = jnp.broadcast_to(partial, o_ref.shape).astype(o_ref.dtype)


def triplet_margin_loss(anchor, pos, neg, margin=MARGIN, eps=EPS,
                        block_rows=DEFAULT_BLOCK_ROWS):
    assert anchor.shape == pos.shape == neg.shape
    assert anchor.ndim == 2, "expected (batch, dim) inputs"
    assert block_rows % 8 == 0

    B, D = anchor.shape
    TB = B if B <= block_rows else block_rows       # full-dim block or 8-aligned tile
    num_blocks = (B + TB - 1) // TB

    kernel = functools.partial(
        _triplet_partial_kernel,
        margin=margin, eps=eps, batch=B, block_rows=TB)

    itemsize = jnp.dtype(anchor.dtype).itemsize
    cost = pl.CostEstimate(
        flops=8 * B * D,                 # 2 diffs, 2 squares, 2 sums, hinge, ...
        transcendentals=2 * B,           # two sqrt per row
        bytes_accessed=3 * B * D * itemsize + num_blocks * 128 * 4,
    )

    in_spec = pl.BlockSpec((TB, D), lambda i: (i, 0))
    partials = pl.pallas_call(
        kernel,
        out_shape=jax.ShapeDtypeStruct((num_blocks, 128), jnp.float32),
        grid=(num_blocks,),
        in_specs=[in_spec, in_spec, in_spec],
        out_specs=pl.BlockSpec((1, 128), lambda i: (i, 0)),
        compiler_params=pltpu.CompilerParams(
            dimension_semantics=("parallel",)),
        cost_estimate=cost,
    )(anchor, pos, neg)

    # Final reduction over per-block partial sums; divide by the true batch.
    return jnp.sum(partials[:, 0]) / B


def _reference(anchor, pos, neg, margin=MARGIN, eps=EPS):
    a = anchor.astype(jnp.float32)
    p = pos.astype(jnp.float32)
    n = neg.astype(jnp.float32)
    d_pos = jnp.sqrt(jnp.sum((a - p + eps) ** 2, axis=-1))
    d_neg = jnp.sqrt(jnp.sum((a - n + eps) ** 2, axis=-1))
    return jnp.mean(jnp.maximum(d_pos - d_neg + margin, 0.0))


if __name__ == "__main__":
    key = jax.random.PRNGKey(0)

    # Case 1: batch == config.batch_size, single block (B <= block_rows).
    k1, k2, k3, key = jax.random.split(key, 4)
    B, D = 64, 128
    anchor = jax.random.normal(k1, (B, D), dtype=jnp.float32)
    pos = jax.random.normal(k2, (B, D), dtype=jnp.float32)
    neg = jax.random.normal(k3, (B, D), dtype=jnp.float32)
    loss = jax.block_until_ready(triplet_margin_loss(anchor, pos, neg))
    ref = jax.block_until_ready(_reference(anchor, pos, neg))
    assert jnp.allclose(loss, ref, rtol=1e-5, atol=1e-5), (loss, ref)

    # Case 2: ragged batch with a multi-block grid (exercises masking +
    # per-block partial sums + "parallel" batch axis).
    k1, k2, k3, key = jax.random.split(key, 4)
    B2, D2 = 100, 128
    anchor2 = jax.random.normal(k1, (B2, D2), dtype=jnp.float32)
    pos2 = jax.random.normal(k2, (B2, D2), dtype=jnp.float32)
    neg2 = jax.random.normal(k3, (B2, D2), dtype=jnp.float32)
    loss2 = jax.block_until_ready(
        triplet_margin_loss(anchor2, pos2, neg2, block_rows=16))
    ref2 = jax.block_until_ready(_reference(anchor2, pos2, neg2))
    assert jnp.allclose(loss2, ref2, rtol=1e-5, atol=1e-5), (loss2, ref2)

    print("KERNEL_OK")
</pallas_src>

<mosaic_0001>
module attributes {stable_mosaic.version = 11 : i64} {
  func.func @_triplet_partial_kernel(%arg0: i32, %arg1: memref<64x128xf32, #tpu.memory_space<vmem>>, %arg2: memref<64x128xf32, #tpu.memory_space<vmem>>, %arg3: memref<64x128xf32, #tpu.memory_space<vmem>>, %arg4: memref<1x128xf32, #tpu.memory_space<vmem>>) attributes {dimension_semantics = [#tpu.dimension_semantics<parallel>], iteration_bounds = array<i64: 1>, scalar_prefetch = 0 : i64, scratch_operands = 0 : i64, tpu.core_type = #tpu.core_type<tc>, window_params = [{transform_indices = @transform_0, window_bounds = array<i64: 64, 128>}, {transform_indices = @transform_1, window_bounds = array<i64: 64, 128>}, {transform_indices = @transform_2, window_bounds = array<i64: 64, 128>}, {transform_indices = @transform_3, window_bounds = array<i64: 1, 128>}]} {
    %c0 = arith.constant 0 : index
    %c0_0 = arith.constant 0 : index
    %0 = vector.load %arg1[%c0, %c0_0] : memref<64x128xf32, #tpu.memory_space<vmem>>, vector<64x128xf32>
    %c0_1 = arith.constant 0 : index
    %c0_2 = arith.constant 0 : index
    %1 = vector.load %arg2[%c0_1, %c0_2] : memref<64x128xf32, #tpu.memory_space<vmem>>, vector<64x128xf32>
    %c0_3 = arith.constant 0 : index
    %c0_4 = arith.constant 0 : index
    %2 = vector.load %arg3[%c0_3, %c0_4] : memref<64x128xf32, #tpu.memory_space<vmem>>, vector<64x128xf32>
    %3 = arith.subf %0, %1 : vector<64x128xf32>
    %cst = arith.constant 9.99999997E-7 : f32
    %4 = vector.broadcast %cst : f32 to vector<64x128xf32>
    %5 = arith.addf %3, %4 : vector<64x128xf32>
    %6 = arith.subf %0, %2 : vector<64x128xf32>
    %cst_5 = arith.constant 9.99999997E-7 : f32
    %7 = vector.broadcast %cst_5 : f32 to vector<64x128xf32>
    %8 = arith.addf %6, %7 : vector<64x128xf32>
    %9 = arith.mulf %5, %5 : vector<64x128xf32>
    %cst_6 = arith.constant dense<0.000000e+00> : vector<64xf32>
    %10 = vector.multi_reduction <add>, %9, %cst_6 [1] : vector<64x128xf32> to vector<64xf32>
    %11 = vector.shape_cast %10 : vector<64xf32> to vector<64x1xf32>
    %12 = math.sqrt %11 : vector<64x1xf32>
    %13 = arith.mulf %8, %8 : vector<64x128xf32>
    %cst_7 = arith.constant dense<0.000000e+00> : vector<64xf32>
    %14 = vector.multi_reduction <add>, %13, %cst_7 [1] : vector<64x128xf32> to vector<64xf32>
    %15 = vector.shape_cast %14 : vector<64xf32> to vector<64x1xf32>
    %16 = math.sqrt %15 : vector<64x1xf32>
    %17 = arith.subf %12, %16 : vector<64x1xf32>
    %cst_8 = arith.constant 1.000000e+00 : f32
    %18 = vector.broadcast %cst_8 : f32 to vector<64x1xf32>
    %19 = arith.addf %17, %18 : vector<64x1xf32>
    %cst_9 = arith.constant 0.000000e+00 : f32
    %20 = vector.broadcast %cst_9 : f32 to vector<64x1xf32>
    %21 = arith.maximumf %19, %20 : vector<64x1xf32>
    %22 = tpu.iota {dimensions = array<i32: 0>} : vector<64x1xi32>
    %c64_i32 = arith.constant 64 : i32
    %23 = arith.muli %arg0, %c64_i32 : i32
    %24 = vector.broadcast %23 : i32 to vector<64x1xi32>
    %25 = arith.addi %22, %24 : vector<64x1xi32>
    %c64_i32_10 = arith.constant 64 : i32
    %26 = vector.broadcast %c64_i32_10 : i32 to vector<64x1xi32>
    %27 = arith.cmpi slt, %25, %26 : vector<64x1xi32>
    %cst_11 = arith.constant 0.000000e+00 : f32
    %28 = vector.broadcast %cst_11 : f32 to vector<64x1xf32>
    %29 = arith.select %27, %21, %28 : vector<64x1xi1>, vector<64x1xf32>
    %30 = vector.shape_cast %29 : vector<64x1xf32> to vector<1x64x1xf32>
    %cst_12 = arith.constant dense<0.000000e+00> : vector<1xf32>
    %31 = vector.multi_reduction <add>, %30, %cst_12 [1, 2] : vector<1x64x1xf32> to vector<1xf32>
    %32 = vector.shape_cast %31 : vector<1xf32> to vector<1x1x1xf32>
    %33 = vector.extract %32[0, 0, 0] : f32 from vector<1x1x1xf32>
    %34 = vector.broadcast %33 : f32 to vector<1x1xf32>
    %35 = vector.shape_cast %34 : vector<1x1xf32> to vector<1x1xf32>
    %36 = vector.broadcast %35 : vector<1x1xf32> to vector<1x128xf32>
    %c0_13 = arith.constant 0 : index
    %c0_14 = arith.constant 0 : index
    %37 = vector.load %arg4[%c0_13, %c0_14] : memref<1x128xf32, #tpu.memory_space<vmem>>, vector<1x128xf32>
    tpu.vector_store %arg4[%c0_13, %c0_14], %36 {strides = array<i32>} : memref<1x128xf32, #tpu.memory_space<vmem>>, vector<1x128xf32>,
    return
  }
  func.func @transform_0(%arg0: i32) -> (i32, i32) {
    %c0_i32 = arith.constant 0 : i32
    %c0_i32_0 = arith.constant 0 : i32
    return %arg0, %c0_i32 : i32, i32
  }
  func.func @transform_1(%arg0: i32) -> (i32, i32) {
    %c0_i32 = arith.constant 0 : i32
    %c0_i32_0 = arith.constant 0 : i32
    return %arg0, %c0_i32 : i32, i32
  }
  func.func @transform_2(%arg0: i32) -> (i32, i32) {
    %c0_i32 = arith.constant 0 : i32
    %c0_i32_0 = arith.constant 0 : i32
    return %arg0, %c0_i32 : i32, i32
  }
  func.func @transform_3(%arg0: i32) -> (i32, i32) {
    %c0_i32 = arith.constant 0 : i32
    %c0_i32_0 = arith.constant 0 : i32
    return %arg0, %c0_i32 : i32, i32
  }
}

</mosaic_0001>

<bundles_post_ra>
// kernel: tpu_custom_call.1
= control target key start
LH: loop header
LB: loop body
LE: loop exit
PB: predicated region body
PF: predicated region fallthrough
CT: control target
= control target key end

     0   :  { %8 = vsyncpa [#allocation3], 0  ;;  %s876_s0 = inlined_call_operand.hbm [shape: f32[64,128], index: 0, kind: input, shape index: {}]   ;;  %s877_s1 = inlined_call_operand.hbm [shape: f32[64,128], index: 1, kind: input, shape index: {}]   ;;  %s878_s2 = inlined_call_operand.hbm [shape: f32[64,128], index: 2, kind: input, shape index: {}]   ;;  %s879_s3 = inlined_call_operand.hbm [shape: f32[1,128], index: 3, kind: output, shape index: {}]  }
   0x1   :  { %9 = vsyncpa [#allocation6], 0 }
   0x2   :  { %10 = vsyncpa [#allocation4], 0  ;;  %s28_s14 = sshll.u32 %s877_s1, 4  ;;  %s604_s15 = smov [#allocation5]   ;;  %s29_s14 = int_to_ptr.hbm [resolvable:$true] %s28_s14 }
   0x3   :  { %s30_s16 = sshll.u32 %s604_s15, 4  ;;  %s15_s19 = sshll.u32 %s876_s0, 4  ;;  %s31_s16 = int_to_ptr.vmem [resolvable:$true] %s30_s16  ;;  %s16_s19 = int_to_ptr.hbm [resolvable:$true] %s15_s19 }
   0x4   :  { %s605_s20 = smov 128   ;;  %s606_s21 = smov 8  }
   0x5   :  { %36 = dma.hbm_to_vmem [thread:$0]  %s29_s14, 1024, %s31_s16, [#allocation6], %s605_s20, %s605_s20, %s606_s21  }
   0x6   :  { %s607_s22 = smov [#allocation2]   ;;  %s41_s26 = sshll.u32 %s878_s2, 4  ;;  %s42_s26 = int_to_ptr.hbm [resolvable:$true] %s41_s26 }
   0x7   :  { %s17_s23 = sshll.u32 %s607_s22, 4  ;;  %s608_s1 = smov [#allocation7]   ;;  %s18_s23 = int_to_ptr.vmem [resolvable:$true] %s17_s23 }
   0x8   :  { %23 = dma.hbm_to_vmem [thread:$0]  %s16_s19, 1024, %s18_s23, [#allocation3], %s605_s20, %s605_s20, %s606_s21  }
   0x9   :  { %s43_s27 = sshll.u32 %s608_s1, 4  ;;  %s44_s27 = int_to_ptr.vmem [resolvable:$true] %s43_s27 }
   0xa   :  { %49 = dma.hbm_to_vmem [thread:$0]  %s42_s26, 1024, %s44_s27, [#allocation6], %s605_s20, %s605_s20, %s606_s21  }
   0xb   :  { %598 = dma.done.wait [#allocation3], 1024  }
   0xc   :  { %599 = vsyncadd [#allocation3], 4294966272 }
   0xd   :  { %600 = dma.done.wait [#allocation6], 2048  }
   0xe   :  { %601 = vsyncadd [#allocation6], 4294965248  ;;  %v64_v0 = vld [vmem:[#allocation2 + $0x10] sm:$0xff]  ;;  %v62_v2 = vld [vmem:[#allocation2] sm:$0xff]  ;;  %s451_s28 = sshll.u32 %s879_s3, 4  ;;  %s609_s29 = smov [#allocation8]   ;;  %s452_s28 = int_to_ptr.hbm [resolvable:$true] %s451_s28 }
   0xf   :  { %v72_v1 = vld [vmem:[#allocation5 + $0x10] sm:$0xff]  ;;  %v78_v4 = vld [vmem:[#allocation7] sm:$0xff]  ;;  %v63_v9 = vld [vmem:[#allocation2 + $0x8] sm:$0xff]  ;;  %s449_s30 = sshll.u32 %s609_s29, 4  ;;  %s450_s30 = int_to_ptr.vmem [resolvable:$true] %s449_s30 }
  0x10   :  { %v88_v3 = vsub.f32 %v64_v0, %v72_v1  ;;  %v70_v5 = vld [vmem:[#allocation5] sm:$0xff]  ;;  %v80_v6 = vld [vmem:[#allocation7 + $0x10] sm:$0xff]  ;;  %v102_v7 = vsub.f32 %v62_v2, %v78_v4  ;;  %v79_v10 = vld [vmem:[#allocation7 + $0x8] sm:$0xff] }
  0x11   :  { %v86_v8 = vsub.f32 %v62_v2, %v70_v5  ;;  %v71_v11 = vld [vmem:[#allocation5 + $0x8] sm:$0xff]  ;;  %v104_v13 = vsub.f32 %v64_v0, %v80_v6  ;;  %v103_v16 = vsub.f32 %v63_v9, %v79_v10  ;;  %v66_v24 = vld [vmem:[#allocation2 + $0x20] sm:$0xff]  ;;  %v65_v26 = vld [vmem:[#allocation2 + $0x18] sm:$0xff] }
  0x12   :  { %v96_v12 = vadd.f32 1e-06, %v88_v3  ;;  %v110_v14 = vadd.f32 1e-06, %v102_v7  ;;  %v87_v17 = vsub.f32 %v63_v9, %v71_v11  ;;  %v74_v25 = vld [vmem:[#allocation5 + $0x20] sm:$0xff]  ;;  %v81_v27 = vld [vmem:[#allocation7 + $0x18] sm:$0xff] }
  0x13   :  { %v94_v15 = vadd.f32 1e-06, %v86_v8  ;;  %v112_v21 = vadd.f32 1e-06, %v104_v13  ;;  %v111_v22 = vadd.f32 1e-06, %v103_v16  ;;  %v90_v30 = vsub.f32 %v66_v24, %v74_v25 }
  0x14   :  { %v120_v18 = vmul.f32 %v96_v12, %v96_v12  ;;  %v238_v19 = vmul.f32 %v110_v14, %v110_v14  ;;  %v95_v23 = vadd.f32 1e-06, %v87_v17  ;;  %v73_v28 = vld [vmem:[#allocation5 + $0x18] sm:$0xff]  ;;  %v105_v33 = vsub.f32 %v65_v26, %v81_v27  ;;  %v67_v38 = vld [vmem:[#allocation2 + $0x28] sm:$0xff]  ;;  %v82_v41 = vld [vmem:[#allocation7 + $0x20] sm:$0xff] }
  0x15   :  { %v118_v20 = vmul.f32 %v94_v15, %v94_v15  ;;  %v240_v29 = vmul.f32 %v112_v21, %v112_v21  ;;  %v239_v31 = vmul.f32 %v111_v22, %v111_v22  ;;  %v89_v34 = vsub.f32 %v65_v26, %v73_v28  ;;  %v83_v39 = vld [vmem:[#allocation7 + $0x28] sm:$0xff]  ;;  %v69_v51 = vld [vmem:[#allocation2 + $0x38] sm:$0xff]  ;;  %v68_v53 = vld [vmem:[#allocation2 + $0x30] sm:$0xff] }
  0x16   :  { %130 = vadd.xlane.f32.xlu2 %v120_v18  ;;  %246 = vadd.xlane.f32.xlu1 %v238_v19  ;;  %v119_v32 = vmul.f32 %v95_v23, %v95_v23  ;;  %v98_v35 = vadd.f32 1e-06, %v90_v30  ;;  %v113_v36 = vadd.f32 1e-06, %v105_v33  ;;  %v75_v40 = vld [vmem:[#allocation5 + $0x28] sm:$0xff]  ;;  %v107_v43 = vsub.f32 %v67_v38, %v83_v39  ;;  %v77_v52 = vld [vmem:[#allocation5 + $0x38] sm:$0xff] }
  0x17   :  { %126 = vadd.xlane.f32.xlu0 %v118_v20  ;;  %v97_v37 = vadd.f32 1e-06, %v89_v34  ;;  %v91_v46 = vsub.f32 %v67_v38, %v75_v40  ;;  %v106_v47 = vsub.f32 %v66_v24, %v82_v41  ;;  %v84_v54 = vld [vmem:[#allocation7 + $0x30] sm:$0xff]  ;;  %v93_v57 = vsub.f32 %v69_v51, %v77_v52  ;;  %v85_v1 = vld [vmem:[#allocation7 + $0x38] sm:$0xff] }
  0x18   :  { %v122_v42 = vmul.f32 %v98_v35, %v98_v35  ;;  %v241_v44 = vmul.f32 %v113_v36, %v113_v36  ;;  %v115_v48 = vadd.f32 1e-06, %v107_v43  ;;  %v76_v55 = vld [vmem:[#allocation5 + $0x30] sm:$0xff]  ;;  %v108_v60 = vsub.f32 %v68_v53, %v84_v54 }
  0x19   :  { %v121_v45 = vmul.f32 %v97_v37, %v97_v37  ;;  %v99_v49 = vadd.f32 1e-06, %v91_v46  ;;  %v114_v50 = vadd.f32 1e-06, %v106_v47  ;;  %v92_v61 = vsub.f32 %v68_v53, %v76_v55 }
  0x1a   :  { %v243_v56 = vmul.f32 %v115_v48, %v115_v48  ;;  %v101_v62 = vadd.f32 1e-06, %v93_v57  ;;  %v116_v63 = vadd.f32 1e-06, %v108_v60  ;;  %v109_v5 = vsub.f32 %v69_v51, %v85_v1 }
  0x1b   :  { %v123_v58 = vmul.f32 %v99_v49, %v99_v49  ;;  %v242_v59 = vmul.f32 %v114_v50, %v114_v50  ;;  %v100_v0 = vadd.f32 1e-06, %v92_v61 }
  0x1c   :  { %v125_v2 = vmul.f32 %v101_v62, %v101_v62  ;;  %v244_v3 = vmul.f32 %v116_v63, %v116_v63  ;;  %v117_v6 = vadd.f32 1e-06, %v109_v5 }
  0x1d   :  { %v124_v4 = vmul.f32 %v100_v0, %v100_v0 }
  0x1e   :  { %250 = vadd.xlane.f32.xlu2 %v240_v29  ;;  %248 = vadd.xlane.f32.xlu1 %v239_v31  ;;  %v245_v7 = vmul.f32 %v117_v6, %v117_v6 }
  0x1f   :  { %128 = vadd.xlane.f32.xlu0 %v119_v32 }
  0x26   :  { %134 = vadd.xlane.f32.xlu2 %v122_v42  ;;  %252 = vadd.xlane.f32.xlu1 %v241_v44 }
  0x27   :  { %132 = vadd.xlane.f32.xlu0 %v121_v45 }
  0x2e   :  { %256 = vadd.xlane.f32.xlu2 %v243_v56  ;;  %136 = vadd.xlane.f32.xlu1 %v123_v58 }
  0x2f   :  { %254 = vadd.xlane.f32.xlu0 %v242_v59 }
  0x36   :  { %140 = vadd.xlane.f32.xlu2 %v125_v2  ;;  %258 = vadd.xlane.f32.xlu1 %v244_v3 }
  0x37   :  { %138 = vadd.xlane.f32.xlu0 %v124_v4 }
  0x3f   :  { %260 = vadd.xlane.f32.xlu0 %v245_v7 }
  0x89   :  { %v639_v8 = vpop.xlane.xlu2 %130  ;;  %v642_v9 = vpop.xlane.xlu1 %246 }
  0x8a   :  { %470 = vrsqrt.f32 %v639_v8  ;;  %v644_v10 = vpop.xlane.xlu0 %126  ;;  %v176_v38 = vand.u32 2147483648, %v639_v8  ;;  %vm269_vm0 = vcmp.eq.f32.partialorder %v642_v9, inf  ;;  %vm173_vm1 = vcmp.eq.f32.partialorder %v639_v8, inf }
  0x8b   :  { %472 = vrsqrt.f32 %v642_v9  ;;  %vm271_vm2 = vcmp.eq.f32.partialorder %v642_v9, 0.0  ;;  %v272_v42 = vand.u32 2147483648, %v642_v9  ;;  %vm149_vm3 = vcmp.eq.f32.partialorder %v644_v10, inf }
  0x8c   :  { %474 = vrsqrt.f32 %v644_v10  ;;  %vm151_vm4 = vcmp.eq.f32.partialorder %v644_v10, 0.0  ;;  %v152_v49 = vand.u32 2147483648, %v644_v10  ;;  %vm175_vm6 = vcmp.eq.f32.partialorder %v639_v8, 0.0 }
  0x90   :  { %v471_v11 = vpop.eup %470 }
  0x91   :  { %v473_v12 = vpop.eup %472  ;;  %v167_v13 = vmul.f32 %v471_v11, %v639_v8  ;;  %v649_v14 = vpop.xlane.xlu2 %250 }
  0x92   :  { %v475_v15 = vpop.eup %474  ;;  %v263_v16 = vmul.f32 %v473_v12, %v642_v9  ;;  %476 = vrsqrt.f32 %v649_v14  ;;  %v653_v17 = vpop.xlane.xlu1 %248  ;;  %vm293_vm5 = vcmp.eq.f32.partialorder %v649_v14, inf  ;;  %v296_v56 = vand.u32 2147483648, %v649_v14 }
  0x93   :  { %v655_v18 = vpop.xlane.xlu0 %128  ;;  %v168_v19 = vmul.f32 %v471_v11, %v167_v13  ;;  %v143_v20 = vmul.f32 %v475_v15, %v644_v10  ;;  %478 = vrsqrt.f32 %v653_v17  ;;  %vm281_vm7 = vcmp.eq.f32.partialorder %v653_v17, inf }
  0x94   :  { %v264_v21 = vmul.f32 %v473_v12, %v263_v16  ;;  %480 = vrsqrt.f32 %v655_v18  ;;  %v284_v5 = vand.u32 2147483648, %v653_v17  ;;  %vm283_vm8 = vcmp.eq.f32.partialorder %v653_v17, 0.0 }
  0x95   :  { %v144_v22 = vmul.f32 %v475_v15, %v143_v20  ;;  %v169_v23 = vmul.f32 0.5, %v168_v19  ;;  %vm161_vm9 = vcmp.eq.f32.partialorder %v655_v18, inf  ;;  %v164_v19 = vand.u32 2147483648, %v655_v18 }
  0x96   :  { %v265_v24 = vmul.f32 0.5, %v264_v21  ;;  %vm163_vm10 = vcmp.eq.f32.partialorder %v655_v18, 0.0  ;;  %vm295_vm15 = vcmp.eq.f32.partialorder %v649_v14, 0.0 }
  0x97   :  { %v145_v25 = vmul.f32 0.5, %v144_v22  ;;  %v170_v32 = vsub.f32 1.5, %v169_v23 }
  0x98   :  { %v477_v26 = vpop.eup %476  ;;  %v266_v27 = vsub.f32 1.5, %v265_v24 }
  0x99   :  { %v479_v28 = vpop.eup %478  ;;  %v146_v29 = vsub.f32 1.5, %v145_v25  ;;  %v287_v30 = vmul.f32 %v477_v26, %v649_v14  ;;  %v661_v31 = vpop.xlane.xlu2 %134  ;;  %v171_v45 = vmul.f32 %v471_v11, %v170_v32 }
  0x9a   :  { %v267_v33 = vmul.f32 %v473_v12, %v266_v27  ;;  %v275_v34 = vmul.f32 %v479_v28, %v653_v17  ;;  %482 = vrsqrt.f32 %v661_v31  ;;  %v665_v35 = vpop.xlane.xlu1 %252  ;;  %v481_v37 = vpop.eup %480  ;;  %v200_v20 = vand.u32 2147483648, %v661_v31 }
  0x9b   :  { %v667_v36 = vpop.xlane.xlu0 %132  ;;  %v288_v39 = vmul.f32 %v477_v26, %v287_v30  ;;  %v155_v41 = vmul.f32 %v481_v37, %v655_v18  ;;  %484 = vrsqrt.f32 %v665_v35  ;;  %v147_v43 = vmul.f32 %v475_v15, %v146_v29 }
  0x9c   :  { %v276_v40 = vmul.f32 %v479_v28, %v275_v34  ;;  %v268_v46 = vmul.f32 %v267_v33, %v642_v9  ;;  %486 = vrsqrt.f32 %v667_v36  ;;  %v172_v60 = vmul.f32 %v171_v45, %v639_v8 }
  0x9d   :  { %v289_v44 = vmul.f32 0.5, %v288_v39  ;;  %v156_v48 = vmul.f32 %v481_v37, %v155_v41  ;;  %v148_v54 = vmul.f32 %v147_v43, %v644_v10  ;;  %v308_v27 = vand.u32 2147483648, %v665_v35 }
  0x9e   :  { %v277_v47 = vmul.f32 0.5, %v276_v40  ;;  %v270_v61 = vsel %vm269_vm0, %v642_v9, %v268_v46  ;;  %v174_v15 = vsel %vm173_vm1, %v639_v8, %v172_v60  ;;  %vm197_vm11 = vcmp.eq.f32.partialorder %v661_v31, inf }
  0x9f   :  { %v290_v50 = vsub.f32 1.5, %v289_v44  ;;  %v157_v53 = vmul.f32 0.5, %v156_v48  ;;  %v150_v6 = vsel %vm149_vm3, %v644_v10, %v148_v54  ;;  %v713_v16 = vsel %vm271_vm2, %v272_v42, %v270_v61 }
  0xa0   :  { %v483_v51 = vpop.eup %482  ;;  %v278_v52 = vsub.f32 1.5, %v277_v47  ;;  %vm305_vm12 = vcmp.eq.f32.partialorder %v665_v35, inf  ;;  %vm185_vm13 = vcmp.eq.f32.partialorder %v667_v36, inf  ;;  %vm199_vm14 = vcmp.eq.f32.partialorder %v661_v31, 0.0 }
  0xa1   :  { %v291_v55 = vmul.f32 %v477_v26, %v290_v50  ;;  %v191_v57 = vmul.f32 %v483_v51, %v661_v31  ;;  %v685_v58 = vpop.xlane.xlu2 %256  ;;  %v485_v59 = vpop.eup %484  ;;  %v158_v1 = vsub.f32 1.5, %v157_v53  ;;  %v721_v26 = vsel %vm151_vm4, %v152_v49, %v150_v6 }
  0xa2   :  { %v279_v62 = vmul.f32 %v479_v28, %v278_v52  ;;  %488 = vrsqrt.f32 %v685_v58  ;;  %v692_v63 = vpop.xlane.xlu1 %136  ;;  %v299_v3 = vmul.f32 %v485_v59, %v665_v35  ;;  %v487_v13 = vpop.eup %486  ;;  %v188_v28 = vand.u32 2147483648, %v667_v36 }
  0xa3   :  { %v694_v0 = vpop.xlane.xlu0 %254  ;;  %v192_v2 = vmul.f32 %v483_v51, %v191_v57  ;;  %490 = vrsqrt.f32 %v692_v63  ;;  %v292_v4 = vmul.f32 %v291_v55, %v649_v14  ;;  %v159_v21 = vmul.f32 %v481_v37, %v158_v1 }
  0xa4   :  { %492 = vrsqrt.f32 %v694_v0  ;;  %v280_v7 = vmul.f32 %v279_v62, %v653_v17  ;;  %v300_v12 = vmul.f32 %v485_v59, %v299_v3  ;;  %v179_v24 = vmul.f32 %v487_v13, %v667_v36 }
  0xa5   :  { %v193_v11 = vmul.f32 0.5, %v192_v2  ;;  %v726_v9 = vsel %vm293_vm5, %v649_v14, %v292_v4  ;;  %v320_v33 = vand.u32 2147483648, %v694_v0  ;;  %v160_v44 = vmul.f32 %v159_v21, %v655_v18 }
  0xa6   :  { %v301_v23 = vmul.f32 0.5, %v300_v12  ;;  %v282_v30 = vsel %vm281_vm7, %v653_v17, %v280_v7  ;;  %v180_v32 = vmul.f32 %v487_v13, %v179_v24  ;;  %v754_v50 = vsel %vm175_vm6, %v176_v38, %v174_v15 }
  0xa7   :  { %v194_v22 = vsub.f32 1.5, %v193_v11  ;;  %v761_v53 = vsel %vm283_vm8, %v284_v5, %v282_v30  ;;  %vm317_vm0 = vcmp.eq.f32.partialorder %v694_v0, inf  ;;  %v162_v8 = vsel %vm161_vm9, %v655_v18, %v160_v44 }
  0xa8   :  { %v489_v25 = vpop.eup %488  ;;  %v302_v10 = vsub.f32 1.5, %v301_v23  ;;  %v181_v46 = vmul.f32 0.5, %v180_v32  ;;  %vm307_vm1 = vcmp.eq.f32.partialorder %v665_v35, 0.0  ;;  %vm187_vm2 = vcmp.eq.f32.partialorder %v667_v36, 0.0 }
  0xa9   :  { %v491_v29 = vpop.eup %490  ;;  %v736_v34 = vpop.xlane.xlu2 %140  ;;  %v195_v39 = vmul.f32 %v483_v51, %v194_v22  ;;  %v323_v40 = vmul.f32 %v489_v25, %v685_v58  ;;  %vm209_vm3 = vcmp.eq.f32.partialorder %v692_v63, inf  ;;  %vm211_vm4 = vcmp.eq.f32.partialorder %v692_v63, 0.0 }
  0xaa   :  { %v493_v37 = vpop.eup %492  ;;  %v203_v41 = vmul.f32 %v491_v29, %v692_v63  ;;  %494 = vrsqrt.f32 %v736_v34  ;;  %v742_v42 = vpop.xlane.xlu1 %258  ;;  %v303_v45 = vmul.f32 %v485_v59, %v302_v10  ;;  %v182_v51 = vsub.f32 1.5, %v181_v46 }
  0xab   :  { %v744_v43 = vpop.xlane.xlu0 %138  ;;  %v311_v47 = vmul.f32 %v493_v37, %v694_v0  ;;  %v324_v48 = vmul.f32 %v489_v25, %v323_v40  ;;  %496 = vrsqrt.f32 %v742_v42  ;;  %v196_v54 = vmul.f32 %v195_v39, %v661_v31 }
  0xac   :  { %v204_v49 = vmul.f32 %v491_v29, %v203_v41  ;;  %498 = vrsqrt.f32 %v744_v43  ;;  %v304_v38 = vmul.f32 %v303_v45, %v665_v35  ;;  %v183_v59 = vmul.f32 %v487_v13, %v182_v51 }
  0xad   :  { %v312_v52 = vmul.f32 %v493_v37, %v311_v47  ;;  %v325_v55 = vmul.f32 0.5, %v324_v48  ;;  %v212_v4 = vand.u32 2147483648, %v692_v63  ;;  %v780_v6 = vsel %vm163_vm10, %v164_v19, %v162_v8 }
  0xae   :  { %v205_v57 = vmul.f32 0.5, %v204_v49  ;;  %v184_v1 = vmul.f32 %v183_v59, %v667_v36  ;;  %v198_v13 = vsel %vm197_vm11, %v661_v31, %v196_v54  ;;  %v306_v21 = vsel %vm305_vm12, %v665_v35, %v304_v38 }
  0xaf   :  { %v313_v17 = vmul.f32 0.5, %v312_v52  ;;  %v326_v61 = vsub.f32 1.5, %v325_v55  ;;  %v201_v39 = vsel %vm199_vm14, %v200_v20, %v198_v13  ;;  %v224_v41 = vand.u32 2147483648, %v744_v43 }
  0xb0   :  { %v495_v60 = vpop.eup %494  ;;  %v206_v62 = vsub.f32 1.5, %v205_v57  ;;  %v186_v18 = vsel %vm185_vm13, %v667_v36, %v184_v1  ;;  %vm221_vm5 = vcmp.eq.f32.partialorder %v744_v43, inf  ;;  %v297_v46 = vsel %vm295_vm15, %v296_v56, %v726_v9 }
  0xb1   :  { %v314_v2 = vsub.f32 1.5, %v313_v17  ;;  %v227_v3 = vmul.f32 %v495_v60, %v736_v34  ;;  %v497_v5 = vpop.eup %496  ;;  %v327_v7 = vmul.f32 %v489_v25, %v326_v61  ;;  %v189_v47 = vsel %vm187_vm2, %v188_v28, %v186_v18 }
  0xb2   :  { %v207_v11 = vmul.f32 %v491_v29, %v206_v62  ;;  %v499_v15 = vpop.eup %498  ;;  %v335_v24 = vmul.f32 %v497_v5, %v742_v42  ;;  %vm223_vm6 = vcmp.eq.f32.partialorder %v744_v43, 0.0  ;;  %v309_v48 = vsel %vm307_vm1, %v308_v27, %v306_v21 }
  0xb3   :  { %v782_v12 = vpop.xlane.xlu0 %260  ;;  %v315_v22 = vmul.f32 %v493_v37, %v314_v2  ;;  %v228_v23 = vmul.f32 %v495_v60, %v227_v3  ;;  %v215_v25 = vmul.f32 %v499_v15, %v744_v43  ;;  %v328_v29 = vmul.f32 %v327_v7, %v685_v58 }
  0xb4   :  { %v208_v19 = vmul.f32 %v207_v11, %v692_v63  ;;  %500 = vrsqrt.f32 %v782_v12  ;;  %v336_v32 = vmul.f32 %v497_v5, %v335_v24  ;;  %vm329_vm7 = vcmp.eq.f32.partialorder %v685_v58, inf }
  0xb5   :  { %v316_v30 = vmul.f32 %v315_v22, %v694_v0  ;;  %v229_v10 = vmul.f32 0.5, %v228_v23  ;;  %v216_v37 = vmul.f32 %v499_v15, %v215_v25  ;;  %vm319_vm8 = vcmp.eq.f32.partialorder %v694_v0, 0.0 }
  0xb6   :  { %v210_v40 = vsel %vm209_vm3, %v692_v63, %v208_v19  ;;  %v337_v45 = vmul.f32 0.5, %v336_v32  ;;  %v330_v9 = vsel %vm329_vm7, %v685_v58, %v328_v29  ;;  %v332_v52 = vand.u32 2147483648, %v685_v58 }
  0xb7   :  { %v230_v44 = vsub.f32 1.5, %v229_v10  ;;  %v318_v31 = vsel %vm317_vm0, %v694_v0, %v316_v30  ;;  %v217_v20 = vmul.f32 0.5, %v216_v37  ;;  %v213_v56 = vsel %vm211_vm4, %v212_v4, %v210_v40 }
  0xb8   :  { %v338_v14 = vsub.f32 1.5, %v337_v45  ;;  %v321_v51 = vsel %vm319_vm8, %v320_v33, %v318_v31  ;;  %vm233_vm9 = vcmp.eq.f32.partialorder %v736_v34, inf  ;;  %vm331_vm10 = vcmp.eq.f32.partialorder %v685_v58, 0.0 }
  0xb9   :  { %v231_v36 = vmul.f32 %v495_v60, %v230_v44  ;;  %v218_v28 = vsub.f32 1.5, %v217_v20  ;;  %vm341_vm11 = vcmp.eq.f32.partialorder %v742_v42, inf  ;;  %v333_v54 = vsel %vm331_vm10, %v332_v52, %v330_v9 }
  0xba   :  { %v501_v49 = vpop.eup %500  ;;  %v339_v63 = vmul.f32 %v497_v5, %v338_v14  ;;  %vm343_vm12 = vcmp.eq.f32.partialorder %v742_v42, 0.0  ;;  %v358_v55 = vsub.f32 %v721_v26, %v713_v16  ;;  %v344_v57 = vand.u32 2147483648, %v742_v42 }
  0xbb   :  { %v347_v35 = vmul.f32 %v501_v49, %v782_v12  ;;  %v219_v27 = vmul.f32 %v499_v15, %v218_v28  ;;  %v359_v8 = vsub.f32 %v780_v6, %v761_v53  ;;  %v232_v58 = vmul.f32 %v231_v36, %v736_v34 }
  0xbc   :  { %v340_v33 = vmul.f32 %v339_v63, %v742_v42  ;;  %v360_v59 = vsub.f32 %v754_v50, %v297_v46  ;;  %v361_v17 = vsub.f32 %v189_v47, %v309_v48  ;;  %v362_v62 = vsub.f32 %v201_v39, %v321_v51 }
  0xbd   :  { %v348_v0 = vmul.f32 %v501_v49, %v347_v35  ;;  %v220_v38 = vmul.f32 %v219_v27, %v744_v43  ;;  %v363_v16 = vsub.f32 %v213_v56, %v333_v54  ;;  %v366_v2 = vadd.f32 1.0, %v358_v55 }
  0xbe   :  { %v342_v61 = vsel %vm341_vm11, %v742_v42, %v340_v33  ;;  %v367_v3 = vadd.f32 1.0, %v359_v8  ;;  %v368_v5 = vadd.f32 1.0, %v360_v59  ;;  %v369_v6 = vadd.f32 1.0, %v361_v17 }
  0xbf   :  { %v349_v60 = vmul.f32 0.5, %v348_v0  ;;  %v222_v26 = vsel %vm221_vm5, %v744_v43, %v220_v38  ;;  %v345_v1 = vsel %vm343_vm12, %v344_v57, %v342_v61  ;;  %vm235_vm13 = vcmp.eq.f32.partialorder %v736_v34, 0.0 }
  0xc0   :  { %v225_v4 = vsel %vm223_vm6, %v224_v41, %v222_v26  ;;  %v370_v7 = vadd.f32 1.0, %v362_v62  ;;  %v374_v42 = vmax.f32 %v366_v2, 0.0  ;;  %v375_v13 = vmax.f32 %v367_v3, 0.0 }
  0xc1   :  { %v350_v53 = vsub.f32 1.5, %v349_v60  ;;  %v364_v50 = vsub.f32 %v225_v4, %v345_v1  ;;  %v376_v15 = vmax.f32 %v368_v5, 0.0  ;;  %v377_v21 = vmax.f32 %v369_v6, 0.0 }
  0xc2   :  { %v234_v22 = vsel %vm233_vm9, %v736_v34, %v232_v58  ;;  %v371_v23 = vadd.f32 1.0, %v363_v16  ;;  %vm417_vm14 = vcmask 7168   ;;  %v378_v18 = vmax.f32 %v370_v7, 0.0 }
  0xc3   :  { %v351_v11 = vmul.f32 %v501_v49, %v350_v53  ;;  %v372_v24 = vadd.f32 1.0, %v364_v50  ;;  %v418_v19 = vsel %vm417_vm14, %v374_v42, 0.0  ;;  %v419_v25 = vsel %vm417_vm14, %v375_v13, 0.0 }
  0xc4   :  { %v236_v29 = vand.u32 2147483648, %v736_v34  ;;  %vm353_vm15 = vcmp.eq.f32.partialorder %v782_v12, inf  ;;  %v356_v30 = vand.u32 2147483648, %v782_v12  ;;  %v420_v10 = vadd.f32 %v419_v25, %v418_v19 }
  0xc5   :  { %v352_v43 = vmul.f32 %v351_v11, %v782_v12  ;;  %vm355_vm0 = vcmp.eq.f32.partialorder %v782_v12, 0.0  ;;  %v421_v37 = vsel %vm417_vm14, %v376_v15, 0.0  ;;  %v423_v39 = vsel %vm417_vm14, %v377_v21, 0.0 }
  0xc6   :  { %v237_v40 = vsel %vm235_vm13, %v236_v29, %v234_v22  ;;  %v422_v44 = vadd.f32 %v421_v37, %v420_v10  ;;  %v379_v46 = vmax.f32 %v371_v23, 0.0  ;;  %v380_v31 = vmax.f32 %v372_v24, 0.0 }
  0xc7   :  { %v354_v32 = vsel %vm353_vm15, %v782_v12, %v352_v43  ;;  %v425_v20 = vsel %vm417_vm14, %v378_v18, 0.0 }
  0xc8   :  { %v357_v41 = vsel %vm355_vm0, %v356_v30, %v354_v32  ;;  %v424_v47 = vadd.f32 %v423_v39, %v422_v44  ;;  %v427_v12 = vsel %vm417_vm14, %v379_v46, 0.0  ;;  %v429_v9 = vsel %vm417_vm14, %v380_v31, 0.0 }
  0xc9   :  { %v365_v45 = vsub.f32 %v237_v40, %v357_v41 }
  0xca   :  { %v426_v14 = vadd.f32 %v425_v20, %v424_v47 }
  0xcb   :  { %v373_v48 = vadd.f32 1.0, %v365_v45 }
  0xcc   :  { %v428_v49 = vadd.f32 %v427_v12, %v426_v14 }
  0xcd   :  { %v381_v56 = vmax.f32 %v373_v48, 0.0 }
  0xce   :  { %v430_v34 = vadd.f32 %v429_v9, %v428_v49 }
  0xcf   :  { %v431_v36 = vsel %vm417_vm14, %v381_v56, 0.0 }
  0xd0   :  { %v432_v28 = vadd.f32 %v431_v36, %v430_v34 }
  0xd2   :  { %433 = vadd.xlane.f32.xlu1 %v432_v28 }
 0x145   :  { %v434_v51 = vpop.xlane.xlu1 %433 }
 0x146   :  { %v435_v52 = vrot.slane %v434_v51, 4 }
 0x148   :  { %v436_v35 = vadd.f32 %v435_v52, %v434_v51 }
 0x14a   :  { %v437_v63 = vrot.slane %v436_v35, 2 }
 0x14c   :  { %v438_v27 = vadd.f32 %v437_v63, %v436_v35 }
 0x14e   :  { %v439_v54 = vrot.slane %v438_v27, 1 }
 0x150   :  { %v440_v55 = vadd.f32 %v439_v54, %v438_v27 }
 0x152   :  { %462 = vpush %v440_v55 }
 0x183   :  { %s463_s4 = spop %462 }
 0x184   :  { %v442_v0 = vstv %s463_s4 }
 0x185   :  { %443 = vst [vmem:[#allocation8] sm:$0x1] %v442_v0 }
 0x186   :  { %454 = dma.vmem_to_hbm [thread:$0]  %s450_s30, 16, %s452_s28, [#allocation4]  }
 0x187   :  { %602 = dma.done.wait [#allocation4], 16  }
 0x188   :  { %603 = vsyncadd [#allocation4], 4294967280 }
 0x189   :  { %459 = vsyncpa [#allocation3], 1 }
 0x18a   :  { %460 = vsyncpa [#allocation6], 1 }
 0x18b   :  { %461 = vsyncpa [#allocation4], 1 }

</bundles_post_ra>
